<compile_context>
chip_gen: v6e
topology: v6e:2x2x1
jax: 0.10.0
libtpu: 0.0.40
codegen_flags: <defaults>
</compile_context>

<pallas_src>
import jax
import jax.numpy as jnp
from jax.experimental import pallas as pl
from jax.experimental.pallas import tpu as pltpu


def _choose_spatial_tile(S, bytes_per_spatial_elem, itemsize,
                         target_bytes=4 * 1024 * 1024):
    """Pick the spatial (lane) tile: a multiple-of-128 divisor of S.

    Preference (per perf review):
      * contiguous DMA run per channel row (ts * itemsize) >= 1 KiB,
      * largest tile whose (tb, tc, ts) x-block stays under target_bytes so a
        double-buffered pipeline fits the scoped-VMEM budget on v5e/v6e/v7x.
    """
    if S % 128 != 0:
        return S  # must take the full (lane-mapped) spatial extent
    divisors = [d for d in range(128, S + 1, 128) if S % d == 0]
    min_run = -(-1024 // itemsize)                      # >= 1 KiB per row
    min_ts = ((max(min_run, 128) + 127) // 128) * 128
    fitting = [d for d in divisors if d * bytes_per_spatial_elem <= target_bytes]
    preferred = [d for d in fitting if d >= min_ts]
    if preferred:
        return max(preferred)
    if fitting:
        longer = [d for d in divisors if d >= min_ts]
        return min(longer) if longer else max(fitting)
    return divisors[0]


def make_pool_kernel(ts: int, inv_spatial: float):
    """Streaming AdaptiveAvgPool2d(1) over (tb, tc, ts) tiles.

    Grid: (batch_blocks, channel_blocks, spatial_blocks); spatial is the
    reduction axis (last).  acc_ref is a lane-partial f32 accumulator
    (tb, tc, 128): the hot loop only does lane-aligned VPU adds; the single
    cross-lane reduce + 1/(H*W) scale happens in the finalize pl.when.
    """
    lane_aligned = (ts % 128 == 0)

    def kernel(x_ref, ctx_ref, acc_ref):
        si = pl.program_id(2)                 # hoisted out of pl.when bodies
        last = pl.num_programs(2) - 1

        @pl.when(si == 0)
        def _():
            acc_ref[...] = jnp.zeros_like(acc_ref)

        if lane_aligned:
            # Static unroll of lane-aligned 128-wide chunks: pure VPU adds,
            # no per-step XLU reduce, no relayout.  Cast per chunk (the
            # HBM->VMEM DMA stays in the input dtype, e.g. bf16).
            partial = x_ref[:, :, 0:128].astype(jnp.float32)
            for off in range(128, ts, 128):
                partial = partial + x_ref[:, :, off:off + 128].astype(jnp.float32)
            acc_ref[...] += partial
        else:
            # Rare fallback (H*W not a multiple of 128 -> single full tile).
            acc_ref[:, :, 0:1] += jnp.sum(
                x_ref[...].astype(jnp.float32), axis=2, keepdims=True)

        @pl.when(si == last)
        def _():
            ctx_ref[...] = jnp.sum(acc_ref[...], axis=2) * inv_spatial

    return kernel


def make_gate_kernel(training: bool):
    """Tiny bottleneck 1x1 conv + BN(eval, folded) + ReLU + 1x1 conv + gate + L1.

    Runs once per call (no grid).  Per review this is <<1% of runtime, so no
    MXU tuning / padding is done here.
    """

    def body(ctx_ref, w1_ref, s_ref, b_ref, w2_ref, mask_ref, norm_ref,
             noise_ref=None):
        # 1x1 conv (no bias) == matmul over channels.
        h = jnp.dot(ctx_ref[...], w1_ref[...],
                    preferred_element_type=jnp.float32)          # (B, Cb)
        # BatchNorm2d (eval-mode running stats, folded) + ReLU.
        h = jnp.maximum(h * s_ref[...] + b_ref[...], 0.0)
        # 1x1 conv (module default bias=-1 => bias disabled).
        logits = jnp.dot(h, w2_ref[...],
                         preferred_element_type=jnp.float32)     # (B, Co)
        if training:
            # Logistic ("gumbel_sample") noise precomputed in the wrapper.
            logits = logits + noise_ref[...]
        # Forward value of the straight-through gate: (logits >= 0).
        mask = (logits >= 0.0).astype(jnp.float32)
        mask_ref[...] = mask
        # mask is 0/1 -> L1 norm is the row sum.
        norm_ref[...] = jnp.sum(mask, axis=1, keepdims=True)

    if training:
        def kernel(ctx_ref, w1_ref, s_ref, b_ref, w2_ref, noise_ref,
                   mask_ref, norm_ref):
            body(ctx_ref, w1_ref, s_ref, b_ref, w2_ref, mask_ref, norm_ref,
                 noise_ref)
    else:
        def kernel(ctx_ref, w1_ref, s_ref, b_ref, w2_ref, mask_ref, norm_ref):
            body(ctx_ref, w1_ref, s_ref, b_ref, w2_ref, mask_ref, norm_ref)

    return kernel


def mask_c_forward(x, w1, bn_gamma, bn_beta, bn_mean, bn_var, w2,
                   training=False, seed=0, bn_eps=1e-5, spatial_tile=None,
                   tile_budget_bytes=4 * 1024 * 1024):
    """JAX wrapper reproducing Mask_c.forward.

    x  : (B, C, H, W), any float dtype (kept as-is for the DMA; f32 accumulation)
    w1 : (C, Cb)   -- conv1 weight, transposed from torch's (Cb, C, 1, 1)
    w2 : (Cb, Co)  -- conv2 weight, transposed from torch's (Co, Cb, 1, 1)
    Returns (mask_c (B, Co, 1, 1), norm (B,), norm_t (1,)).
    """
    B, C, H, W = x.shape
    S = H * W
    Cb = w1.shape[1]
    Co = w2.shape[1]

    # Lane-dense layout: spatial axis (H*W) last -> maps to the 128-wide lanes.
    x3 = x.reshape(B, C, S)

    # Minimal legal batch tile (output-block constraint): 8, or the full batch.
    tb = 8 if B % 8 == 0 else B
    nb = B // tb

    # v7x has 2 TensorCores: when the batch axis yields a single parallel
    # block, split the channel axis into two parallel blocks (the pooled
    # output block's last dim must stay a multiple of 128 or full C).
    if nb >= 2 or C % 256 != 0:
        tc = C
    else:
        tc = C // 2
    nc = C // tc

    # Spatial tile: ~4 MiB x-blocks, >=1 KiB contiguous DMA runs per row.
    if spatial_tile is None:
        ts = _choose_spatial_tile(S, tb * tc * x.dtype.itemsize,
                                  x.dtype.itemsize, tile_budget_bytes)
    else:
        ts = spatial_tile
    assert S % ts == 0, "spatial_tile must divide H*W"
    assert ts % 128 == 0 or ts == S, "spatial_tile must be 128-aligned or full"
    ns = S // ts

    # ---- Kernel 1: HBM-streaming pooling reduction -> context (B, C) f32 ----
    pool_kernel = make_pool_kernel(ts, 1.0 / float(S))
    context = pl.pallas_call(
        pool_kernel,
        out_shape=jax.ShapeDtypeStruct((B, C), jnp.float32),
        grid_spec=pltpu.PrefetchScalarGridSpec(
            num_scalar_prefetch=0,
            grid=(nb, nc, ns),
            in_specs=[pl.BlockSpec((tb, tc, ts),
                                   lambda bi, ci, si: (bi, ci, si))],
            out_specs=pl.BlockSpec((tb, tc), lambda bi, ci, si: (bi, ci)),
            scratch_shapes=[pltpu.VMEM((tb, tc, 128), jnp.float32)],
        ),
        compiler_params=pltpu.CompilerParams(
            dimension_semantics=("parallel", "parallel", "arbitrary"),
            vmem_limit_bytes=32 * 1024 * 1024),
    )(x3)

    # Fold eval-mode BatchNorm into scale/shift.
    # TODO(synk): training-mode BatchNorm (batch statistics) not implemented;
    # eval-mode running stats are used (running_mean=0, running_var=1 default).
    inv_std = 1.0 / jnp.sqrt(bn_var.astype(jnp.float32) + bn_eps)
    bn_scale = (bn_gamma * inv_std).reshape(1, Cb).astype(jnp.float32)
    bn_shift = (bn_beta - bn_mean * bn_gamma * inv_std).reshape(1, Cb).astype(jnp.float32)

    # ---- Kernel 2: bottleneck + BN + ReLU + conv + Gumbel gate + L1 norm ----
    gate_args = [context, w1.astype(jnp.float32), bn_scale, bn_shift,
                 w2.astype(jnp.float32)]
    if training:
        # gumbel_sample depends only on the logits shape, so the noise is
        # generated here (keeps the kernel free of pltpu.prng_* and portable
        # across Mosaic and the interpret fallback).
        u = jax.random.uniform(jax.random.PRNGKey(seed), (B, Co),
                               dtype=jnp.float32)
        noise = jnp.log(u + 1e-8) - jnp.log(1.0 - u + 1e-8)
        gate_args.append(noise)

    # TODO(synk): the straight-through gradient of the gate is not reproduced
    # (forward-only kernel; no custom_vjp).
    mask2d, norm2d = pl.pallas_call(
        make_gate_kernel(training),
        out_shape=(jax.ShapeDtypeStruct((B, Co), jnp.float32),
                   jax.ShapeDtypeStruct((B, 1), jnp.float32)),
    )(*gate_args)

    mask_c = mask2d.reshape(B, Co, 1, 1)
    norm = norm2d.reshape(B)
    norm_t = jnp.array([Co], dtype=jnp.float32)     # self.eleNum_c
    return mask_c, norm, norm_t


if __name__ == "__main__":
    # Module hyper-params (synthetic, deterministic init).
    B, inplanes, H, W = 2, 16, 16, 16
    outplanes = 8
    fc_reduction = 4
    bottleneck = inplanes // fc_reduction

    key = jax.random.PRNGKey(0)
    kx, k1, k2 = jax.random.split(key, 3)

    x = jax.random.normal(kx, (B, inplanes, H, W), dtype=jnp.float32)
    # Conv weights (torch shapes (Cb, C, 1, 1) / (Co, Cb, 1, 1) -> transposed 2D).
    w1 = jax.random.normal(k1, (inplanes, bottleneck), dtype=jnp.float32) * 0.1
    w2 = jax.random.normal(k2, (bottleneck, outplanes), dtype=jnp.float32) * 0.1
    # BatchNorm default init: gamma=1, beta=0, running_mean=0, running_var=1.
    bn_gamma = jnp.ones((bottleneck,), jnp.float32)
    bn_beta = jnp.zeros((bottleneck,), jnp.float32)
    bn_mean = jnp.zeros((bottleneck,), jnp.float32)
    bn_var = jnp.ones((bottleneck,), jnp.float32)

    # Eval path with a forced 2-step spatial reduction (exercises the accumulator).
    mask_c, norm, norm_t = mask_c_forward(
        x, w1, bn_gamma, bn_beta, bn_mean, bn_var, w2,
        training=False, spatial_tile=128)
    jax.block_until_ready((mask_c, norm, norm_t))

    # Pure-JAX reference (eval path).
    context = x.mean(axis=(2, 3))
    inv_std = 1.0 / jnp.sqrt(bn_var + 1e-5)
    h = jnp.maximum((context @ w1) * (bn_gamma * inv_std)
                    + (bn_beta - bn_mean * bn_gamma * inv_std), 0.0)
    logits_ref = h @ w2
    ref_mask = (logits_ref >= 0.0).astype(jnp.float32).reshape(B, outplanes, 1, 1)
    ref_norm = ref_mask.sum(axis=(1, 2, 3))

    assert mask_c.shape == (B, outplanes, 1, 1)
    assert norm.shape == (B,)
    assert norm_t.shape == (1,)
    assert jnp.allclose(mask_c, ref_mask)
    assert jnp.allclose(norm, ref_norm)
    assert jnp.allclose(norm_t, jnp.array([float(outplanes)]))

    # Auto-chosen spatial tile must agree with the forced tiling.
    mask_c2, norm2, _ = mask_c_forward(
        x, w1, bn_gamma, bn_beta, bn_mean, bn_var, w2, training=False)
    jax.block_until_ready((mask_c2, norm2))
    assert jnp.allclose(mask_c2, mask_c)
    assert jnp.allclose(norm2, norm)

    # bf16 input path: DMA stays bf16, per-chunk cast + f32 accumulation in-kernel.
    mask_b, norm_b, _ = mask_c_forward(
        x.astype(jnp.bfloat16), w1, bn_gamma, bn_beta, bn_mean, bn_var, w2,
        training=False, spatial_tile=128)
    jax.block_until_ready((mask_b, norm_b))
    assert bool(jnp.all((mask_b == 0.0) | (mask_b == 1.0)))
    assert jnp.allclose(norm_b, mask_b.sum(axis=(1, 2, 3)))

    # Training path (logistic/Gumbel noise + hard threshold forward value).
    mask_t, norm_tr, _ = mask_c_forward(
        x, w1, bn_gamma, bn_beta, bn_mean, bn_var, w2,
        training=True, seed=123, spatial_tile=128)
    jax.block_until_ready((mask_t, norm_tr))
    assert mask_t.shape == (B, outplanes, 1, 1)
    assert bool(jnp.all((mask_t == 0.0) | (mask_t == 1.0)))
    assert jnp.allclose(norm_tr, mask_t.sum(axis=(1, 2, 3)))

    print("KERNEL_OK")
</pallas_src>

<mosaic_0001>
module attributes {stable_mosaic.version = 11 : i64} {
  func.func @kernel(%arg0: i32, %arg1: i32, %arg2: i32, %arg3: memref<2x16x128xf32, #tpu.memory_space<vmem>>, %arg4: memref<2x16xf32, #tpu.memory_space<vmem>>, %arg5: memref<2x16x128xf32, #tpu.memory_space<vmem>>) attributes {dimension_semantics = [#tpu.dimension_semantics<parallel>, #tpu.dimension_semantics<parallel>, #tpu.dimension_semantics<arbitrary>], iteration_bounds = array<i64: 1, 1, 2>, scalar_prefetch = 0 : i64, scratch_operands = 1 : i64, tpu.core_type = #tpu.core_type<tc>, window_params = [{transform_indices = @transform_0, window_bounds = array<i64: 2, 16, 128>}, {transform_indices = @transform_1, window_bounds = array<i64: 2, 16>}]} {
    %c0_i32 = arith.constant 0 : i32
    %0 = arith.cmpi eq, %arg2, %c0_i32 : i32
    %1 = arith.extui %0 : i1 to i32
    %c0_i32_0 = arith.constant 0 : i32
    %2 = arith.cmpi ne, %1, %c0_i32_0 : i32
    scf.if %2 {
      %cst = arith.constant 0.000000e+00 : f32
      %10 = vector.broadcast %cst : f32 to vector<2x16x128xf32>
      %c0_10 = arith.constant 0 : index
      %c0_11 = arith.constant 0 : index
      %c0_12 = arith.constant 0 : index
      %11 = vector.load %arg5[%c0_10, %c0_11, %c0_12] : memref<2x16x128xf32, #tpu.memory_space<vmem>>, vector<2x16x128xf32>
      tpu.vector_store %arg5[%c0_10, %c0_11, %c0_12], %10 {strides = array<i32>} : memref<2x16x128xf32, #tpu.memory_space<vmem>>, vector<2x16x128xf32>,
    } else {
    }
    %c0 = arith.constant 0 : index
    %c0_1 = arith.constant 0 : index
    %c0_2 = arith.constant 0 : index
    %3 = vector.load %arg3[%c0, %c0_1, %c0_2] : memref<2x16x128xf32, #tpu.memory_space<vmem>>, vector<2x16x128xf32>
    %c0_3 = arith.constant 0 : index
    %c0_4 = arith.constant 0 : index
    %c0_5 = arith.constant 0 : index
    %4 = vector.load %arg5[%c0_3, %c0_4, %c0_5] : memref<2x16x128xf32, #tpu.memory_space<vmem>>, vector<2x16x128xf32>
    %5 = arith.addf %4, %3 : vector<2x16x128xf32>
    %c0_6 = arith.constant 0 : index
    %c0_7 = arith.constant 0 : index
    %c0_8 = arith.constant 0 : index
    %6 = vector.load %arg5[%c0_6, %c0_7, %c0_8] : memref<2x16x128xf32, #tpu.memory_space<vmem>>, vector<2x16x128xf32>
    tpu.vector_store %arg5[%c0_6, %c0_7, %c0_8], %5 {strides = array<i32>} : memref<2x16x128xf32, #tpu.memory_space<vmem>>, vector<2x16x128xf32>,
    %c1_i32 = arith.constant 1 : i32
    %7 = arith.cmpi eq, %arg2, %c1_i32 : i32
    %8 = arith.extui %7 : i1 to i32
    %c0_i32_9 = arith.constant 0 : i32
    %9 = arith.cmpi ne, %8, %c0_i32_9 : i32
    scf.if %9 {
      %c0_10 = arith.constant 0 : index
      %c0_11 = arith.constant 0 : index
      %c0_12 = arith.constant 0 : index
      %10 = vector.load %arg5[%c0_10, %c0_11, %c0_12] : memref<2x16x128xf32, #tpu.memory_space<vmem>>, vector<2x16x128xf32>
      %cst = arith.constant dense<0.000000e+00> : vector<2x16xf32>
      %11 = vector.multi_reduction <add>, %10, %cst [2] : vector<2x16x128xf32> to vector<2x16xf32>
      %cst_13 = arith.constant 3.906250e-03 : f32
      %12 = vector.broadcast %cst_13 : f32 to vector<2x16xf32>
      %13 = arith.mulf %11, %12 : vector<2x16xf32>
      %c0_14 = arith.constant 0 : index
      %c0_15 = arith.constant 0 : index
      %14 = vector.load %arg4[%c0_14, %c0_15] : memref<2x16xf32, #tpu.memory_space<vmem>>, vector<2x16xf32>
      tpu.vector_store %arg4[%c0_14, %c0_15], %13 {strides = array<i32>} : memref<2x16xf32, #tpu.memory_space<vmem>>, vector<2x16xf32>,
    } else {
    }
    return
  }
  func.func @transform_0(%arg0: i32, %arg1: i32, %arg2: i32) -> (i32, i32, i32) {
    %c0_i32 = arith.constant 0 : i32
    return %arg0, %arg1, %arg2 : i32, i32, i32
  }
  func.func @transform_1(%arg0: i32, %arg1: i32, %arg2: i32) -> (i32, i32) {
    %c0_i32 = arith.constant 0 : i32
    return %arg0, %arg1 : i32, i32
  }
}

</mosaic_0001>

<bundles_post_ra>
// kernel: tpu_custom_call.1
= control target key start
LH: loop header
LB: loop body
LE: loop exit
PB: predicated region body
PF: predicated region fallthrough
CT: control target
= control target key end

     0   :  { %6 = vsyncpa [#allocation4], 0  ;;  %s631_s0 = inlined_call_operand.hbm [shape: f32[2,16,256], index: 0, kind: input, shape index: {}]   ;;  %s632_s1 = inlined_call_operand.hbm [shape: f32[2,16], index: 1, kind: output, shape index: {}]  }
   0x1   :  { %8 = vsyncpa [#allocation4 + $0x1], 0 }
   0x2   :  { %9 = vsyncpa [#allocation5], 0  ;;  %s517_s6 = smov 0   ;;  %s519_s7 = smov 0  }
   0x3   :  { %s521_s8 = smov 0   ;;  %s523_s9 = smov 0  }
   0x4   :  { %s525_s10 = smov 0   ;;  %s527_s11 = smov 0  }
   0x5 LB: > { %s314_s12 = sadd.s32 4294967295, %s499_s11   ;;  %s27_s13 = sadd.s32 1, %s495_s10  ;;  %s499_s11 = sphi %s527_s11, %s15_s11   ;;  %s495_s10 = sphi %s525_s10, %s641_s10   ;;  %s491_s9 = sphi %s523_s9, %s640_s9   ;;  %s487_s8 = sphi %s521_s8, %s639_s8   ;;  %s483_s7 = sphi %s519_s7, %s638_s7   ;;  %s479_s6 = sphi %s517_s6, %s637_s6  }
   0x6   : > { %p28_p0 = scmp.ge.s32.totalorder %s27_s13, 2  ;;  %s45_s14 = sadd.s32 1, %s487_s8 }
   0x7   : > { %p52_p1 = scmp.ne.s32.totalorder %s487_s8, %s483_s7  ;;  %p53_p2 = scmp.eq.s32.totalorder %s499_s11, 0 }
   0x8   : > { %s643_s13 = smov (%p28_p0, %s27_s13), 0  ;;  %p58_p4 = scmp.ne.s32.totalorder %s483_s7, %s479_s6 }
   0x9   : > { %p553_p3 = por %p53_p2, %p52_p1  ;;  %s41_s16 = ssub.s32 %s495_s10, %s643_s13 }
   0xa   : > { %p59_p5 = scmp.eq.s32.totalorder %s314_s12, 0  ;;  %p43_p6 = scmp.eq.s32.totalorder %s41_s16, 0 }
   0xb   : > { %p337_p8 = scmp.lt.s32.totalorder %s499_s11, 2  ;;  %s110_s19 = sand.u32 1, %s487_s8  }
   0xc   : > { %p562_p7 = por %p59_p5, %p58_p4  ;;  %s318_s20 = sshll.u32 %s495_s10, 7 }
   0xd   : > { %s568_s18 = scalar_select %p43_p6, %s487_s8, %s45_s14  }
   0xe   : > { %s317_s21 = sshll.u32 %s110_s19, 5  ;;  %s125_s24 = scalar_lea.hbm %s631_s0, %s318_s20 }
   0xf   : > { %s114_s25 = scalar_lea.vmem [#allocation3], %s317_s21  ;;  %p577_p9 = pnand %p337_p8, %p553_p3 }
  0x10   : > { %s126_s26 = sshll.u32 %s114_s25, 4  ;;  %p319_p10 = scmp.ge.s32.totalorder %s499_s11, 1  ;;  %s127_s26 = int_to_ptr.vmem [resolvable:$true] %s126_s26 }
  0x11   : > { %s111_s28 = scalar_lea.sflag [#allocation4], %s110_s19  ;;  %p395_p11 = pneg %p577_p9 }
  0x12   : > { %s406_s29 = scalar_lea.vmem %s127_s26, 512  ;;  %s501_s30 = smov [#allocation3]  }
  0x13   : > { %p407_p12 = scmp.ne.s32.totalorder %s127_s26, %s406_s29  ;;  %s411_s2 = sshll.u32 %s501_s30, 4  ;;  %s412_s2 = int_to_ptr.vmem [resolvable:$false] %s411_s2 }
  0x14   : > { %s413_s3 = scalar_lea.vmem %s412_s2, 1024  ;;  %p414_p1 = scmp.lt.s32.totalorder %s127_s26, %s412_s2 }
  0x15   : > { %p409_p13 = pnand %p407_p12, %p395_p11  ;;  %p415_p2 = scmp.lt.s32.totalorder %s413_s3, %s406_s29 }
  0x17   : > { %p410_p0 = pneg %p409_p13  ;;  %p416_p3 = por %p415_p2, %p414_p1 }
  0x19   : > { %p417_p4 = pnand %p416_p3, %p410_p0 }
  0x1b   : > { %420 = shalt.err (!%p417_p4)
}
  0x1c   : > { %s502_s4 = smov 256   ;;  %s503_s5 = smov 128  }
  0x1d   : > { %s504_s6 = smov 8   ;;  %p134_p5 = scmp.lt.s32.totalorder %s499_s11, 3 }
  0x1e   : > { %336 = dma.hbm_to_vmem [thread:$0]  (!%p577_p9), %s125_s24, 512, %s127_s26, %s111_s28, %s502_s4, %s503_s5, %s504_s6  }
  0x1f   : > { %p135_p6 = pnand %p319_p10, %p134_p5 }
  0x20   : > { %s140_s14 = sand.u32 (!%p135_p6), 1, %s483_s7  }
  0x21   : > { %138 = sbr.rel (%p135_p6) target bundleno = 230 (0xe6), region = 24  ;;  %s320_s15 = sshll.u32 (!%p135_p6), %s140_s14, 5 }
  0x22   : > { %s141_s16 = scalar_lea.sflag (!%p135_p6), [#allocation4], %s140_s14  ;;  %s144_s19 = scalar_lea.vmem (!%p135_p6), [#allocation3], %s320_s15 }
  0x26   : > { %470 = dma.done.wait (%p562_p7), %s141_s16, 512  }
  0x27   : > { %472 = vsyncadd (%p562_p7), %s141_s16, 4294966784  ;;  %p321_p8 = scmp.ne.s32.totalorder %s491_s9, 0 }
  0x29   : > { %163 = sbr.rel (%p321_p8) target bundleno = 49 (0x31), region = 32 }
  0x2e   : > { %v505_v0 = vmov 0.0  }
  0x2f   : > { %164 = vst [vmem:[#allocation2 + $0x10] sm:$0xff] %v505_v0  ;;  %165 = vst [vmem:[#allocation2] sm:$0xff] %v505_v0 }
  0x30   : > { %166 = vst [vmem:[#allocation2 + $0x18] sm:$0xff] %v505_v0  ;;  %167 = vst [vmem:[#allocation2 + $0x8] sm:$0xff] %v505_v0 }
  0x31 PF: > { %v168_v1 = vld [vmem:[%s144_s19] sm:$0xff]  ;;  %v169_v3 = vld [vmem:[%s144_s19 + $0x8] sm:$0xff]  ;;  %v170_v6 = vld [vmem:[%s144_s19 + $0x10] sm:$0xff]  ;;  %p322_p7 = scmp.ne.s32.totalorder %s491_s9, 1 }
  0x32   : > { %v171_v10 = vld [vmem:[%s144_s19 + $0x18] sm:$0xff] }
  0x36   : > { %v172_v2 = vld [vmem:[#allocation2 + $0x10] sm:$0xff]  ;;  %v173_v5 = vld [vmem:[#allocation2] sm:$0xff]  ;;  %187 = sbr.rel (%p322_p7) target bundleno = 215 (0xd7), region = 36 }
  0x37   : > { %v176_v4 = vadd.f32 %v172_v2, %v168_v1  ;;  %v174_v7 = vld [vmem:[#allocation2 + $0x18] sm:$0xff]  ;;  %v177_v8 = vadd.f32 %v173_v5, %v169_v3  ;;  %v175_v11 = vld [vmem:[#allocation2 + $0x8] sm:$0xff] }
  0x38   : > { %v178_v9 = vadd.f32 %v174_v7, %v170_v6  ;;  %v179_v12 = vadd.f32 %v175_v11, %v171_v10 }
  0x39   : > { %180 = vst [vmem:[#allocation2 + $0x10] sm:$0xff] %v176_v4  ;;  %181 = vst [vmem:[#allocation2] sm:$0xff] %v177_v8 }
  0x3a   : > { %182 = vst [vmem:[#allocation2 + $0x18] sm:$0xff] %v178_v9  ;;  %183 = vst [vmem:[#allocation2 + $0x8] sm:$0xff] %v179_v12 }
  0x3b   : > { %v208_v17 = vlaneseq  ;;  %vm219_vm0 = vcmask 130112   ;;  %vm230_vm1 = vcmask 1041409   ;;  %vm233_vm2 = vcmask 123904  }
  0x3d   : > { %v209_v18 = vand.u32 127, %v208_v17  ;;  %v211_v19 = vshrl.u32 %v208_v17, 7 }
  0x3f   : > { %v214_v20 = vadd.s32 4294967288, %v209_v18  ;;  %v212_v23 = vsub.s32 %v209_v18, %v211_v19 }
  0x40   : > { %v188_v14 = vld [vmem:[#allocation2 + $0x10] sm:$0xff]  ;;  %v189_v16 = vld [vmem:[#allocation2] sm:$0xff] }
  0x41   : > { %v190_v13 = vld [vmem:[#allocation2 + $0x18] sm:$0xff]  ;;  %192 = vadd.xlane.f32.xlu0 %v188_v14  ;;  %v191_v15 = vld [vmem:[#allocation2 + $0x8] sm:$0xff]  ;;  %v217_v26 = vsub.s32 %v214_v20, %v211_v19 }
  0x42   : > { %196 = vadd.xlane.f32.xlu1 %v190_v13 }
  0x45   : > { %194 = vadd.xlane.f32.xlu0 %v189_v16 }
  0x46   : > { %198 = vadd.xlane.f32.xlu1 %v191_v15 }
  0xca   : > { %v193_v22 = vpop.xlane.xlu0 %192 }
  0xcb   : > { %v197_v21 = vpop.xlane.xlu1 %196  ;;  %v200_v25 = vmul.f32 0.00390625, %v193_v22 }
  0xcc   : > { %v202_v24 = vmul.f32 0.00390625, %v197_v21 }
  0xcd   : > { %v213_v32 = vrot.slane %v200_v25, %v212_v23 }
  0xce   : > { %v195_v28 = vpop.xlane.xlu0 %194  ;;  %v224_v31 = vrot.slane %v202_v24, %v212_v23 }
  0xcf   : > { %v199_v27 = vpop.xlane.xlu1 %198  ;;  %v201_v30 = vmul.f32 0.00390625, %v195_v28 }
  0xd0   : > { %v203_v29 = vmul.f32 0.00390625, %v199_v27 }
  0xd1   : > { %v218_v34 = vrot.slane %v201_v30, %v217_v26 }
  0xd2   : > { %v228_v33 = vrot.slane %v203_v29, %v217_v26 }
  0xd3   : > { %v220_v36 = vsel %vm219_vm0, %v218_v34, %v213_v32 }
  0xd4   : > { %v229_v35 = vsel %vm219_vm0, %v228_v33, %v224_v31 }
  0xd5   : > { %v231_v37 = vsel %vm230_vm1, %v229_v35, %v220_v36 }
  0xd6   : > { %234 = vst.msk [vmem:[#allocation6] sm:$0x3] %vm233_vm2, %v231_v37 }
  0xd7 PF: > { %p598_p9 = scmp.eq.s32.totalorder %s314_s12, 1  ;;  %s506_s17 = smov [#allocation6]  }
  0xd8   : > { %s245_s20 = sshll.u32 %s506_s17, 4  ;;  %s246_s20 = int_to_ptr.vmem [resolvable:$true] %s245_s20 }
  0xd9   : > { %s421_s21 = scalar_lea.vmem %s246_s20, 32  ;;  %p428_p13 = scmp.lt.s32.totalorder %s246_s20, %s246_s20 }
  0xda   : > { %p422_p10 = scmp.ne.s32.totalorder %s246_s20, %s421_s21  ;;  %p429_p0 = scmp.lt.s32.totalorder %s421_s21, %s421_s21 }
  0xdc   : > { %p423_p11 = pnand %p422_p10, %p598_p9  ;;  %p430_p1 = por %p429_p0, %p428_p13 }
  0xde   : > { %p424_p12 = pneg %p423_p11 }
  0xe0   : > { %p431_p2 = pnand %p430_p1, %p424_p12 }
  0xe2   : > { %434 = shalt.err (!%p431_p2)
}
  0xe3   : > { %330 = dma.vmem_to_hbm [thread:$0]  (%p598_p9), %s246_s20, 32, %s632_s1, [#allocation5]  }
  0xe4   : > { %474 = dma.done.wait (%p598_p9), [#allocation5], 32  }
  0xe5   : > { %476 = vsyncadd (%p598_p9), [#allocation5], 4294967264 }
  0xe6 PF: > { %s15_s11 = sadd.s32 1, %s499_s11   ;;  %s637_s6 = smov %s483_s7 }
  0xe7   : > { %p12_p3 = scmp.ge.s32.totalorder %s15_s11, 4   ;;  %s638_s7 = smov %s487_s8 }
  0xe8   : > { %s639_s8 = smov %s568_s18  ;;  %s640_s9 = smov %s495_s10 }
  0xe9   : > { %s641_s10 = smov %s643_s13  ;;  %14 = sbr.rel (!%p12_p3) target bundleno = 5 (0x5), region = 70 }
  0xee   :  { %258 = vsyncpa [#allocation4], 1 }
  0xef   :  { %260 = vsyncpa [#allocation4 + $0x1], 1 }
  0xf0   :  { %261 = vsyncpa [#allocation5], 1 }
  0xf1   :  { %263 = vsyncpa [#allocation5 + $0x1], 1 }

</bundles_post_ra>
